<compile_context>
chip_gen: v7x
topology: tpu7x:2x2x1
jax: 0.10.0
libtpu: 0.0.40
codegen_flags: <defaults>
</compile_context>

<pallas_src>
import functools
import math

import numpy as np
import jax
import jax.numpy as jnp
from jax.experimental import pallas as pl
from jax.experimental.pallas import tpu as pltpu


# ============================================================================
# Fully fused forward kernel (no grid: everything fits in VMEM at this size).
# Activation rows are ordered (lr, b, s).
# ============================================================================
def _fused_forward_kernel(
        inp_ref, sl_ref,
        gridT_ref, gsq_ref, negi_ref,
        g0p0_ref, g0p1_ref, g0r0_ref, g0r1_ref,
        pwx_ref, r1wx_ref, r1b1_ref, r1w2_ref,
        adds0_ref, ladds_ref, lw_ref,
        ow_ref, ob_ref,
        o_ref,
        *, B, S, C, n_layers, res_after, adt):
    f32 = jnp.float32

    def mm(a, w):
        return jnp.dot(a, w, preferred_element_type=f32)

    def leaky(x):
        return jnp.where(x >= 0, x, x * 0.1)

    # ---- Gaussian kernel regression (fit_predict) for both sound locations --
    gridT = gridT_ref[...]                    # (2, G) grid xy (transposed)
    gsq = gsq_ref[...]                        # (1, G) sum(grid^2, -1)
    negi = negi_ref[...]                      # (1, G) -1 / (2 * bw^2)

    def grid_weights(px, py):                 # px, py: (B, 1) f32
        cross = px * gridT[0:1, :] + py * gridT[1:2, :]          # (B, G)
        sqd = (px * px + py * py) + gsq - 2.0 * cross             # |p - g|^2
        gauss = jnp.exp(sqd * negi)                               # (B, G)
        # NOTE: reference divides by the raw sum (no epsilon); kept as-is.
        mag = jnp.sum(gauss, axis=-1, keepdims=True)              # (B, 1)
        return gauss / mag                                        # (B, G) f32

    sl = sl_ref[...]                                              # (B, 4) f32
    gw0 = grid_weights(sl[:, 0:1], sl[:, 1:2])                    # sound_loc_v0
    gw1 = grid_weights(sl[:, 2:3], sl[:, 3:4])                    # sound_loc_v1

    # Grid-feature contributions with grid_0 pre-folded into the weights:
    #   total_grid @ W[:2gc] == gw0 @ (grid_0 @ Wv0) + gw1 @ (grid_0 @ Wv1)
    pg = mm(gw0, g0p0_ref[...]) + mm(gw1, g0p1_ref[...])          # (B, C) f32
    rg = mm(gw0, g0r0_ref[...]) + mm(gw1, g0r1_ref[...])          # (B, C) f32

    inp = inp_ref[...]                                            # (B*S, in_ch) adt

    # ---- proj(my_input) + left_right_0 + rot_0 (proj_b folded in adds0) -----
    proj_x = mm(inp, pwx_ref[...])                                # (B*S, C) f32
    add0 = (adds0_ref[...] + pg[None, :, :]).astype(adt)          # (2, B, C)
    act = (proj_x.astype(adt).reshape(B, S, C)[None, :, :, :]     # broadcast dup,
           + add0[:, :, None, :])                                 # no concat copy
    act = act.reshape(2 * B * S, C)                               # rows (lr, b, s)

    # ---- residual_1 branch (res1_b2 folded into ladds[res_after]) -----------
    res1 = None
    if res_after is not None:
        r1 = mm(inp, r1wx_ref[...]).reshape(B, S, C)              # f32
        r1 = r1 + (rg + r1b1_ref[...])[:, None, :]
        r1 = leaky(r1)
        res1 = mm(r1.reshape(B * S, C).astype(adt),
                  r1w2_ref[...]).astype(adt)                      # (B*S, C) adt

    # ---- LeakyReLU + Linear stack; biases & embeds pre-folded into ladds ----
    for k in range(n_layers):
        h = mm(leaky(act), lw_ref[k])                             # (2B*S, C) f32
        act = h.astype(adt) + ladds_ref[k]
        if res_after is not None and k == res_after:
            act = (act.reshape(2, B * S, C)
                   + res1[None, :, :]).reshape(2 * B * S, C)

    # ---- out_layer (weight zero-padded to a lane-dense 128 width) -----------
    o_ref[...] = (mm(act, ow_ref[...]) + ob_ref[...]).astype(o_ref.dtype)


# ============================================================================
# One-time weight preprocessing (hoisted out of the jitted per-call path).
# ============================================================================
def prepare(params, *, num_block, grid_ch, bandwidth_min, bandwidth_max,
            float_amt, act_dtype=jnp.bfloat16):
    C = params["proj_w"].shape[1]
    gc = grid_ch
    adt = act_dtype
    n_layers = num_block - 2
    res_after = n_layers // 2 - 1
    if res_after < 0:
        res_after = None

    prep = {}
    # grid-regression constants (parameter-only)
    bw = jnp.clip(params["bandwidths"], bandwidth_min, bandwidth_max)
    baseline = params["grid_coors_xy"] + jnp.tanh(params["xy_offset"]) * float_amt
    prep["gridT"] = baseline.T                                     # (2, G)
    prep["gsq"] = jnp.sum(baseline * baseline, axis=-1)[None, :]   # (1, G)
    prep["negi"] = (-1.0 / (2.0 * bw * bw))[None, :]               # (1, G)

    # fold grid_0 into the grid-feature blocks of proj / residual_1 weights
    g0 = params["grid_0"]                                          # (G, gc)
    pw, r1w = params["proj_w"], params["res1_w1"]
    prep["g0p0"] = g0 @ pw[:gc]                                    # (G, C) f32
    prep["g0p1"] = g0 @ pw[gc:2 * gc]
    prep["g0r0"] = g0 @ r1w[:gc]
    prep["g0r1"] = g0 @ r1w[gc:2 * gc]
    prep["pwx"] = pw[2 * gc:].astype(adt)
    prep["r1wx"] = r1w[2 * gc:].astype(adt)
    prep["r1b1"] = params["res1_b1"].reshape(1, C)
    prep["r1w2"] = params["res1_w2"].astype(adt)
    prep["lw"] = (params["layers_w"].astype(adt) if n_layers > 0
                  else jnp.zeros((1, C, C), adt))

    output_ch = params["out_w"].shape[1]
    out_pad = max(128, ((output_ch + 127) // 128) * 128)
    prep["ow"] = jnp.zeros((C, out_pad), adt).at[:, :output_ch].set(
        params["out_w"].astype(adt))
    prep["ob"] = jnp.zeros((1, out_pad), jnp.float32).at[:, :output_ch].set(
        params["out_b"].reshape(1, -1))

    # rot-independent part of the per-layer embeddings, with proj_b /
    # layers_b[k] / res1_b2 folded in (one VPU add per layer in the kernel).
    biases = [params["proj_b"]]
    for k in range(n_layers):
        b = params["layers_b"][k]
        if res_after is not None and k == res_after:
            b = b + params["res1_b2"]
        biases.append(b)
    prep["lr_bias"] = params["left_right"] + jnp.stack(biases)[:, None, :]  # (nb-1,2,C)
    prep["rot"] = params["rot"]                                             # (4,nb-1,C)

    cfg = dict(C=C, n_layers=n_layers, res_after=res_after,
               output_ch=output_ch, out_pad=out_pad, adt=adt)
    return prep, cfg


# ============================================================================
# Forward pass (jit this with cfg bound via functools.partial).
# ============================================================================
def forward(prep, input_stuff, rot_idx, sound_loc, *, cfg):
    B, S, _ = input_stuff.shape
    C, n_layers = cfg["C"], cfg["n_layers"]
    res_after, out_pad = cfg["res_after"], cfg["out_pad"]
    output_ch, adt = cfg["output_ch"], cfg["adt"]

    # per-call additive embeddings: left_right_k + rot_{idx}[k] (+ folded biases)
    rot_sel = jnp.take(prep["rot"], rot_idx, axis=0)               # (B, nb-1, C)
    adds = (prep["lr_bias"][:, :, None, :]
            + jnp.transpose(rot_sel, (1, 0, 2))[:, None, :, :])    # (nb-1, 2, B, C)
    adds0 = adds[0]                                                # (2, B, C) f32
    if n_layers > 0:
        ladds = jnp.broadcast_to(
            adds[1:, :, :, None, :], (n_layers, 2, B, S, C)
        ).reshape(n_layers, 2 * B * S, C).astype(adt)
    else:
        ladds = jnp.zeros((1, 2 * B * S, C), adt)

    inp2d = input_stuff.reshape(B * S, -1).astype(adt)

    kernel = functools.partial(
        _fused_forward_kernel, B=B, S=S, C=C, n_layers=n_layers,
        res_after=res_after, adt=adt)

    operands = (inp2d, sound_loc,
                prep["gridT"], prep["gsq"], prep["negi"],
                prep["g0p0"], prep["g0p1"], prep["g0r0"], prep["g0r1"],
                prep["pwx"], prep["r1wx"], prep["r1b1"], prep["r1w2"],
                adds0, ladds, prep["lw"],
                prep["ow"], prep["ob"])

    # advisory cost estimate + explicit scoped-VMEM limit
    M = 2 * B * S
    in_ch = inp2d.shape[1]
    G = prep["gridT"].shape[1]
    flops = 2 * (4 * B * G * C
                 + 2 * B * S * in_ch * C
                 + B * S * C * C
                 + n_layers * M * C * C
                 + M * C * out_pad)
    bytes_accessed = (sum(int(np.prod(a.shape)) * a.dtype.itemsize
                          for a in operands) + M * out_pad * 4)
    vmem_limit = int(min(48 << 20, max(16 << 20, 4 * bytes_accessed)))

    out = pl.pallas_call(
        kernel,
        out_shape=jax.ShapeDtypeStruct((M, out_pad), jnp.float32),
        compiler_params=pltpu.CompilerParams(vmem_limit_bytes=vmem_limit),
        cost_estimate=pl.CostEstimate(flops=int(flops),
                                      transcendentals=int(2 * B * G),
                                      bytes_accessed=int(bytes_accessed)),
    )(*operands)

    # rows are ordered (lr, b, s); slice padded lanes BEFORE the transpose.
    return out.reshape(2, B, S, out_pad)[..., :output_ch].transpose(1, 2, 0, 3)


# ============================================================================
# Deterministic parameter construction (matches module __init__ shapes).
# ============================================================================
def init_params(key, *, input_ch, intermediate_ch, grid_ch, num_block, output_ch,
                grid_gap, grid_bandwidth, min_xy, max_xy):
    keys = iter(jax.random.split(key, 64))
    C = intermediate_ch
    p = {}
    p["left_right"] = jnp.stack(
        [jax.random.normal(next(keys), (2, C), jnp.float32) / math.sqrt(C)
         for _ in range(num_block - 1)], axis=0)                  # (nb-1, 2, C)
    p["rot"] = jnp.stack(
        [jax.random.normal(next(keys), (num_block - 1, C), jnp.float32) / math.sqrt(C)
         for _ in range(4)], axis=0)                              # (4, nb-1, C)

    def lin(k, i, o):
        kw, kb = jax.random.split(k)
        bound = 1.0 / math.sqrt(i)
        return (jax.random.uniform(kw, (i, o), jnp.float32, -bound, bound),
                jax.random.uniform(kb, (o,), jnp.float32, -bound, bound))

    # NOTE: the PyTorch module hard-codes residual_1's grid-feature width to
    # 128; that only matches grid_ch == 64.  Use 2*grid_ch so shapes stay
    # consistent for any grid_ch.
    p["proj_w"], p["proj_b"] = lin(next(keys), input_ch + 2 * grid_ch, C)
    p["res1_w1"], p["res1_b1"] = lin(next(keys), input_ch + 2 * grid_ch, C)
    p["res1_w2"], p["res1_b2"] = lin(next(keys), C, C)

    lw, lb = [], []
    for _ in range(num_block - 2):
        w, b = lin(next(keys), C, C)
        lw.append(w)
        lb.append(b)
    p["layers_w"] = (jnp.stack(lw, 0) if lw else jnp.zeros((0, C, C), jnp.float32))
    p["layers_b"] = (jnp.stack(lb, 0) if lb else jnp.zeros((0, C), jnp.float32))
    p["out_w"], p["out_b"] = lin(next(keys), C, output_ch)

    gx = np.arange(min_xy[0], max_xy[0], grid_gap)
    gy = np.arange(min_xy[1], max_xy[1], grid_gap)
    gxm, gym = np.meshgrid(gx, gy)
    xy = np.stack([gxm.flatten(), gym.flatten()], axis=1).astype(np.float32)
    G = xy.shape[0]
    p["grid_coors_xy"] = jnp.asarray(xy)
    p["xy_offset"] = jnp.zeros((G, 2), jnp.float32)
    p["bandwidths"] = jnp.full((G,), grid_bandwidth, jnp.float32)
    p["grid_0"] = (jax.random.normal(next(keys), (G, grid_ch), jnp.float32)
                   / math.sqrt(grid_ch))
    return p


# ============================================================================
# Pure-JAX f32 reference (mirrors the PyTorch module) for a numeric check.
# ============================================================================
def reference_forward(params, input_stuff, rot_idx, sound_loc, *, num_block,
                      bandwidth_min=0.1, bandwidth_max=0.5, float_amt=0.1):
    B, S, _ = input_stuff.shape
    n_layers = num_block - 2
    leaky = lambda x: jnp.where(x >= 0, x, 0.1 * x)

    bw = jnp.clip(params["bandwidths"], bandwidth_min, bandwidth_max)
    base = params["grid_coors_xy"] + jnp.tanh(params["xy_offset"]) * float_amt

    def fit_predict(pred):
        d = (jnp.sum(pred ** 2, -1, keepdims=True)
             + jnp.sum(base ** 2, -1)[None, :]
             - 2.0 * pred @ base.T)
        g = jnp.exp(-d / (2.0 * bw[None, :] ** 2))
        return (g @ params["grid_0"]) / jnp.sum(g, axis=1, keepdims=True)

    f0 = fit_predict(sound_loc[:, :2])
    f1 = fit_predict(sound_loc[:, 2:])
    tg = jnp.concatenate([f0, f1], axis=-1)
    tg = jnp.broadcast_to(tg[:, None, :], (B, S, tg.shape[-1]))
    my_input = jnp.concatenate([tg, input_stuff], axis=-1)

    rot_sel = jnp.take(params["rot"], rot_idx, axis=0)             # (B, nb-1, C)
    out = my_input @ params["proj_w"] + params["proj_b"]           # (B, S, C)
    out = jnp.repeat(out[:, :, None, :], 2, axis=2)                # (B, S, 2, C)
    out = out + params["left_right"][0][None, None] + rot_sel[:, 0][:, None, None, :]
    for k in range(n_layers):
        h = leaky(out) @ params["layers_w"][k] + params["layers_b"][k]
        out = h + params["left_right"][k + 1][None, None] + rot_sel[:, k + 1][:, None, None, :]
        if k == n_layers // 2 - 1:
            r = (leaky(my_input @ params["res1_w1"] + params["res1_b1"])
                 @ params["res1_w2"] + params["res1_b2"])
            out = out + r[:, :, None, :]
    return out @ params["out_w"] + params["out_b"]


# ============================================================================
if __name__ == "__main__":
    key = jax.random.PRNGKey(0)
    k_param, k_in, k_loc = jax.random.split(key, 3)

    # small shapes consistent with the module
    B, S = 2, 8
    input_ch, intermediate_ch, grid_ch = 64, 128, 64
    num_block, output_ch = 4, 1

    params = init_params(
        k_param,
        input_ch=input_ch, intermediate_ch=intermediate_ch, grid_ch=grid_ch,
        num_block=num_block, output_ch=output_ch,
        grid_gap=0.25, grid_bandwidth=0.25,
        min_xy=(-0.5, -0.5), max_xy=(0.5, 0.5),   # -> 4x4 = 16 grid points
    )

    input_stuff = jax.random.normal(k_in, (B, S, input_ch), jnp.float32)
    sound_loc = jax.random.uniform(k_loc, (B, 4), jnp.float32, -0.4, 0.4)
    rot_idx = jnp.array([0, 2], jnp.int32)        # one rotation index per batch

    # one-time weight prep (hoisted out of the jitted per-call path);
    # use act_dtype=jnp.float32 on v5e (no bf16 VPU there).
    prep, cfg = prepare(params, num_block=num_block, grid_ch=grid_ch,
                        bandwidth_min=0.1, bandwidth_max=0.5, float_amt=0.1,
                        act_dtype=jnp.bfloat16)

    fwd = jax.jit(functools.partial(forward, cfg=cfg))
    out = fwd(prep, input_stuff, rot_idx, sound_loc)
    jax.block_until_ready(out)

    assert out.shape == (B, S, 2, output_ch), out.shape
    assert bool(jnp.all(jnp.isfinite(out)))

    # numeric check vs the f32 reference (bf16 MXU operands -> loose tolerance)
    ref = reference_forward(params, input_stuff, rot_idx, sound_loc,
                            num_block=num_block)
    err = float(jnp.max(jnp.abs(out - ref)))
    assert err < 0.15, f"max abs err vs reference: {err}"

    print("KERNEL_OK")
</pallas_src>

<mosaic_0001>
module attributes {stable_mosaic.version = 11 : i64} {
  func.func @_fused_forward_kernel(%arg0: memref<16x64xbf16, #tpu.memory_space<vmem>>, %arg1: memref<2x4xf32, #tpu.memory_space<vmem>>, %arg2: memref<2x16xf32, #tpu.memory_space<vmem>>, %arg3: memref<1x16xf32, #tpu.memory_space<vmem>>, %arg4: memref<1x16xf32, #tpu.memory_space<vmem>>, %arg5: memref<16x128xf32, #tpu.memory_space<vmem>>, %arg6: memref<16x128xf32, #tpu.memory_space<vmem>>, %arg7: memref<16x128xf32, #tpu.memory_space<vmem>>, %arg8: memref<16x128xf32, #tpu.memory_space<vmem>>, %arg9: memref<64x128xbf16, #tpu.memory_space<vmem>>, %arg10: memref<64x128xbf16, #tpu.memory_space<vmem>>, %arg11: memref<1x128xf32, #tpu.memory_space<vmem>>, %arg12: memref<128x128xbf16, #tpu.memory_space<vmem>>, %arg13: memref<2x2x128xf32, #tpu.memory_space<vmem>>, %arg14: memref<2x32x128xbf16, #tpu.memory_space<vmem>>, %arg15: memref<2x128x128xbf16, #tpu.memory_space<vmem>>, %arg16: memref<128x128xbf16, #tpu.memory_space<vmem>>, %arg17: memref<1x128xf32, #tpu.memory_space<vmem>>, %arg18: memref<32x128xf32, #tpu.memory_space<vmem>>) attributes {dimension_semantics = [], scalar_prefetch = 0 : i64, scratch_operands = 0 : i64, tpu.core_type = #tpu.core_type<tc>} {
    %c0 = arith.constant 0 : index
    %c0_0 = arith.constant 0 : index
    %0 = vector.load %arg2[%c0, %c0_0] : memref<2x16xf32, #tpu.memory_space<vmem>>, vector<2x16xf32>
    %c0_1 = arith.constant 0 : index
    %c0_2 = arith.constant 0 : index
    %1 = vector.load %arg3[%c0_1, %c0_2] : memref<1x16xf32, #tpu.memory_space<vmem>>, vector<1x16xf32>
    %c0_3 = arith.constant 0 : index
    %c0_4 = arith.constant 0 : index
    %2 = vector.load %arg4[%c0_3, %c0_4] : memref<1x16xf32, #tpu.memory_space<vmem>>, vector<1x16xf32>
    %c0_5 = arith.constant 0 : index
    %c0_6 = arith.constant 0 : index
    %3 = vector.load %arg1[%c0_5, %c0_6] : memref<2x4xf32, #tpu.memory_space<vmem>>, vector<2x4xf32>
    %4 = vector.extract_strided_slice %3 {offsets = [0, 0], sizes = [2, 1], strides = [1, 1]} : vector<2x4xf32> to vector<2x1xf32>
    %5 = vector.extract_strided_slice %3 {offsets = [0, 1], sizes = [2, 1], strides = [1, 1]} : vector<2x4xf32> to vector<2x1xf32>
    %6 = vector.extract_strided_slice %0 {offsets = [0, 0], sizes = [1, 16], strides = [1, 1]} : vector<2x16xf32> to vector<1x16xf32>
    %7 = vector.broadcast %4 : vector<2x1xf32> to vector<2x16xf32>
    %8 = vector.broadcast %6 : vector<1x16xf32> to vector<2x16xf32>
    %9 = arith.mulf %7, %8 : vector<2x16xf32>
    %10 = vector.extract_strided_slice %0 {offsets = [1, 0], sizes = [1, 16], strides = [1, 1]} : vector<2x16xf32> to vector<1x16xf32>
    %11 = vector.broadcast %5 : vector<2x1xf32> to vector<2x16xf32>
    %12 = vector.broadcast %10 : vector<1x16xf32> to vector<2x16xf32>
    %13 = arith.mulf %11, %12 : vector<2x16xf32>
    %14 = arith.addf %9, %13 : vector<2x16xf32>
    %15 = arith.mulf %4, %4 : vector<2x1xf32>
    %16 = arith.mulf %5, %5 : vector<2x1xf32>
    %17 = arith.addf %15, %16 : vector<2x1xf32>
    %18 = vector.broadcast %17 : vector<2x1xf32> to vector<2x16xf32>
    %19 = vector.broadcast %1 : vector<1x16xf32> to vector<2x16xf32>
    %20 = arith.addf %18, %19 : vector<2x16xf32>
    %cst = arith.constant 2.000000e+00 : f32
    %21 = vector.broadcast %cst : f32 to vector<2x16xf32>
    %22 = arith.mulf %21, %14 : vector<2x16xf32>
    %23 = arith.subf %20, %22 : vector<2x16xf32>
    %24 = vector.broadcast %2 : vector<1x16xf32> to vector<2x16xf32>
    %25 = arith.mulf %23, %24 : vector<2x16xf32>
    %26 = math.exp %25 : vector<2x16xf32>
    %cst_7 = arith.constant dense<0.000000e+00> : vector<2xf32>
    %27 = vector.multi_reduction <add>, %26, %cst_7 [1] : vector<2x16xf32> to vector<2xf32>
    %28 = vector.shape_cast %27 : vector<2xf32> to vector<2x1xf32>
    %29 = vector.broadcast %28 : vector<2x1xf32> to vector<2x16xf32>
    %30 = arith.divf %26, %29 : vector<2x16xf32>
    %31 = vector.extract_strided_slice %3 {offsets = [0, 2], sizes = [2, 1], strides = [1, 1]} : vector<2x4xf32> to vector<2x1xf32>
    %32 = vector.extract_strided_slice %3 {offsets = [0, 3], sizes = [2, 1], strides = [1, 1]} : vector<2x4xf32> to vector<2x1xf32>
    %33 = vector.extract_strided_slice %0 {offsets = [0, 0], sizes = [1, 16], strides = [1, 1]} : vector<2x16xf32> to vector<1x16xf32>
    %34 = vector.broadcast %31 : vector<2x1xf32> to vector<2x16xf32>
    %35 = vector.broadcast %33 : vector<1x16xf32> to vector<2x16xf32>
    %36 = arith.mulf %34, %35 : vector<2x16xf32>
    %37 = vector.extract_strided_slice %0 {offsets = [1, 0], sizes = [1, 16], strides = [1, 1]} : vector<2x16xf32> to vector<1x16xf32>
    %38 = vector.broadcast %32 : vector<2x1xf32> to vector<2x16xf32>
    %39 = vector.broadcast %37 : vector<1x16xf32> to vector<2x16xf32>
    %40 = arith.mulf %38, %39 : vector<2x16xf32>
    %41 = arith.addf %36, %40 : vector<2x16xf32>
    %42 = arith.mulf %31, %31 : vector<2x1xf32>
    %43 = arith.mulf %32, %32 : vector<2x1xf32>
    %44 = arith.addf %42, %43 : vector<2x1xf32>
    %45 = vector.broadcast %44 : vector<2x1xf32> to vector<2x16xf32>
    %46 = vector.broadcast %1 : vector<1x16xf32> to vector<2x16xf32>
    %47 = arith.addf %45, %46 : vector<2x16xf32>
    %cst_8 = arith.constant 2.000000e+00 : f32
    %48 = vector.broadcast %cst_8 : f32 to vector<2x16xf32>
    %49 = arith.mulf %48, %41 : vector<2x16xf32>
    %50 = arith.subf %47, %49 : vector<2x16xf32>
    %51 = vector.broadcast %2 : vector<1x16xf32> to vector<2x16xf32>
    %52 = arith.mulf %50, %51 : vector<2x16xf32>
    %53 = math.exp %52 : vector<2x16xf32>
    %cst_9 = arith.constant dense<0.000000e+00> : vector<2xf32>
    %54 = vector.multi_reduction <add>, %53, %cst_9 [1] : vector<2x16xf32> to vector<2xf32>
    %55 = vector.shape_cast %54 : vector<2xf32> to vector<2x1xf32>
    %56 = vector.broadcast %55 : vector<2x1xf32> to vector<2x16xf32>
    %57 = arith.divf %53, %56 : vector<2x16xf32>
    %c0_10 = arith.constant 0 : index
    %c0_11 = arith.constant 0 : index
    %58 = vector.load %arg5[%c0_10, %c0_11] : memref<16x128xf32, #tpu.memory_space<vmem>>, vector<16x128xf32>
    %cst_12 = arith.constant dense<0.000000e+00> : vector<2x128xf32>
    %59 = tpu.matmul %30, %58, %cst_12 {dimension_numbers = #tpu.dot_dimension_numbers<[1], [0], [0], [1], [0, 0, 1, 1], [], []>} : vector<2x16xf32>, vector<16x128xf32>, vector<2x128xf32> -> vector<2x128xf32>
    %c0_13 = arith.constant 0 : index
    %c0_14 = arith.constant 0 : index
    %60 = vector.load %arg6[%c0_13, %c0_14] : memref<16x128xf32, #tpu.memory_space<vmem>>, vector<16x128xf32>
    %cst_15 = arith.constant dense<0.000000e+00> : vector<2x128xf32>
    %61 = tpu.matmul %57, %60, %cst_15 {dimension_numbers = #tpu.dot_dimension_numbers<[1], [0], [0], [1], [0, 0, 1, 1], [], []>} : vector<2x16xf32>, vector<16x128xf32>, vector<2x128xf32> -> vector<2x128xf32>
    %62 = arith.addf %59, %61 : vector<2x128xf32>
    %c0_16 = arith.constant 0 : index
    %c0_17 = arith.constant 0 : index
    %63 = vector.load %arg7[%c0_16, %c0_17] : memref<16x128xf32, #tpu.memory_space<vmem>>, vector<16x128xf32>
    %cst_18 = arith.constant dense<0.000000e+00> : vector<2x128xf32>
    %64 = tpu.matmul %30, %63, %cst_18 {dimension_numbers = #tpu.dot_dimension_numbers<[1], [0], [0], [1], [0, 0, 1, 1], [], []>} : vector<2x16xf32>, vector<16x128xf32>, vector<2x128xf32> -> vector<2x128xf32>
    %c0_19 = arith.constant 0 : index
    %c0_20 = arith.constant 0 : index
    %65 = vector.load %arg8[%c0_19, %c0_20] : memref<16x128xf32, #tpu.memory_space<vmem>>, vector<16x128xf32>
    %cst_21 = arith.constant dense<0.000000e+00> : vector<2x128xf32>
    %66 = tpu.matmul %57, %65, %cst_21 {dimension_numbers = #tpu.dot_dimension_numbers<[1], [0], [0], [1], [0, 0, 1, 1], [], []>} : vector<2x16xf32>, vector<16x128xf32>, vector<2x128xf32> -> vector<2x128xf32>
    %67 = arith.addf %64, %66 : vector<2x128xf32>
    %c0_22 = arith.constant 0 : index
    %c0_23 = arith.constant 0 : index
    %68 = vector.load %arg0[%c0_22, %c0_23] : memref<16x64xbf16, #tpu.memory_space<vmem>>, vector<16x64xbf16>
    %c0_24 = arith.constant 0 : index
    %c0_25 = arith.constant 0 : index
    %69 = vector.load %arg9[%c0_24, %c0_25] : memref<64x128xbf16, #tpu.memory_space<vmem>>, vector<64x128xbf16>
    %cst_26 = arith.constant dense<0.000000e+00> : vector<16x128xf32>
    %70 = tpu.matmul %68, %69, %cst_26 {dimension_numbers = #tpu.dot_dimension_numbers<[1], [0], [0], [1], [0, 0, 1, 1], [], []>} : vector<16x64xbf16>, vector<64x128xbf16>, vector<16x128xf32> -> vector<16x128xf32>
    %c0_27 = arith.constant 0 : index
    %c0_28 = arith.constant 0 : index
    %c0_29 = arith.constant 0 : index
    %71 = vector.load %arg13[%c0_27, %c0_28, %c0_29] : memref<2x2x128xf32, #tpu.memory_space<vmem>>, vector<2x2x128xf32>
    %72 = vector.shape_cast %62 : vector<2x128xf32> to vector<1x2x128xf32>
    %73 = vector.broadcast %72 : vector<1x2x128xf32> to vector<2x2x128xf32>
    %74 = arith.addf %71, %73 : vector<2x2x128xf32>
    %75 = arith.truncf %74 : vector<2x2x128xf32> to vector<2x2x128xbf16>
    %76 = arith.truncf %70 : vector<16x128xf32> to vector<16x128xbf16>
    %77 = vector.shape_cast %76 : vector<16x128xbf16> to vector<2x8x128xbf16>
    %78 = vector.shape_cast %77 : vector<2x8x128xbf16> to vector<1x2x8x128xbf16>
    %79 = vector.shape_cast %75 : vector<2x2x128xbf16> to vector<2x2x1x128xbf16>
    %80 = vector.broadcast %78 : vector<1x2x8x128xbf16> to vector<2x2x8x128xbf16>
    %81 = vector.broadcast %79 : vector<2x2x1x128xbf16> to vector<2x2x8x128xbf16>
    %82 = arith.addf %80, %81 : vector<2x2x8x128xbf16>
    %83 = vector.shape_cast %82 : vector<2x2x8x128xbf16> to vector<32x128xbf16>
    %c0_30 = arith.constant 0 : index
    %c0_31 = arith.constant 0 : index
    %84 = vector.load %arg10[%c0_30, %c0_31] : memref<64x128xbf16, #tpu.memory_space<vmem>>, vector<64x128xbf16>
    %cst_32 = arith.constant dense<0.000000e+00> : vector<16x128xf32>
    %85 = tpu.matmul %68, %84, %cst_32 {dimension_numbers = #tpu.dot_dimension_numbers<[1], [0], [0], [1], [0, 0, 1, 1], [], []>} : vector<16x64xbf16>, vector<64x128xbf16>, vector<16x128xf32> -> vector<16x128xf32>
    %86 = vector.shape_cast %85 : vector<16x128xf32> to vector<2x8x128xf32>
    %c0_33 = arith.constant 0 : index
    %c0_34 = arith.constant 0 : index
    %87 = vector.load %arg11[%c0_33, %c0_34] : memref<1x128xf32, #tpu.memory_space<vmem>>, vector<1x128xf32>
    %88 = vector.broadcast %87 : vector<1x128xf32> to vector<2x128xf32>
    %89 = arith.addf %67, %88 : vector<2x128xf32>
    %90 = vector.shape_cast %89 : vector<2x128xf32> to vector<2x1x128xf32>
    %91 = vector.broadcast %90 : vector<2x1x128xf32> to vector<2x8x128xf32>
    %92 = arith.addf %86, %91 : vector<2x8x128xf32>
    %cst_35 = arith.constant 0.000000e+00 : f32
    %93 = vector.broadcast %cst_35 : f32 to vector<2x8x128xf32>
    %94 = arith.cmpf oge, %92, %93 : vector<2x8x128xf32>
    %cst_36 = arith.constant 1.000000e-01 : f32
    %95 = vector.broadcast %cst_36 : f32 to vector<2x8x128xf32>
    %96 = arith.mulf %92, %95 : vector<2x8x128xf32>
    %97 = arith.select %94, %92, %96 : vector<2x8x128xi1>, vector<2x8x128xf32>
    %98 = vector.shape_cast %97 : vector<2x8x128xf32> to vector<16x128xf32>
    %99 = arith.truncf %98 : vector<16x128xf32> to vector<16x128xbf16>
    %c0_37 = arith.constant 0 : index
    %c0_38 = arith.constant 0 : index
    %100 = vector.load %arg12[%c0_37, %c0_38] : memref<128x128xbf16, #tpu.memory_space<vmem>>, vector<128x128xbf16>
    %cst_39 = arith.constant dense<0.000000e+00> : vector<16x128xf32>
    %101 = tpu.matmul %99, %100, %cst_39 {dimension_numbers = #tpu.dot_dimension_numbers<[1], [0], [0], [1], [0, 0, 1, 1], [], []>} : vector<16x128xbf16>, vector<128x128xbf16>, vector<16x128xf32> -> vector<16x128xf32>
    %102 = arith.truncf %101 : vector<16x128xf32> to vector<16x128xbf16>
    %cst_40 = arith.constant 0.000000e+00 : bf16
    %103 = vector.broadcast %cst_40 : bf16 to vector<32x128xbf16>
    %104 = arith.cmpf oge, %83, %103 : vector<32x128xbf16>
    %cst_41 = arith.constant 1.000980e-01 : bf16
    %105 = vector.broadcast %cst_41 : bf16 to vector<32x128xbf16>
    %106 = arith.mulf %83, %105 : vector<32x128xbf16>
    %107 = arith.select %104, %83, %106 : vector<32x128xi1>, vector<32x128xbf16>
    %c0_42 = arith.constant 0 : index
    %c0_43 = arith.constant 0 : index
    %c0_44 = arith.constant 0 : index
    %108 = vector.load %arg15[%c0_42, %c0_43, %c0_44] : memref<2x128x128xbf16, #tpu.memory_space<vmem>>, vector<1x128x128xbf16>
    %109 = vector.shape_cast %108 : vector<1x128x128xbf16> to vector<128x128xbf16>
    %cst_45 = arith.constant dense<0.000000e+00> : vector<32x128xf32>
    %110 = tpu.matmul %107, %109, %cst_45 {dimension_numbers = #tpu.dot_dimension_numbers<[1], [0], [0], [1], [0, 0, 1, 1], [], []>} : vector<32x128xbf16>, vector<128x128xbf16>, vector<32x128xf32> -> vector<32x128xf32>
    %111 = arith.truncf %110 : vector<32x128xf32> to vector<32x128xbf16>
    %c0_46 = arith.constant 0 : index
    %c0_47 = arith.constant 0 : index
    %c0_48 = arith.constant 0 : index
    %112 = vector.load %arg14[%c0_46, %c0_47, %c0_48] : memref<2x32x128xbf16, #tpu.memory_space<vmem>>, vector<1x32x128xbf16>
    %113 = vector.shape_cast %112 : vector<1x32x128xbf16> to vector<32x128xbf16>
    %114 = arith.addf %111, %113 : vector<32x128xbf16>
    %115 = vector.shape_cast %114 : vector<32x128xbf16> to vector<2x16x128xbf16>
    %116 = vector.shape_cast %102 : vector<16x128xbf16> to vector<1x16x128xbf16>
    %117 = vector.broadcast %116 : vector<1x16x128xbf16> to vector<2x16x128xbf16>
    %118 = arith.addf %115, %117 : vector<2x16x128xbf16>
    %119 = vector.shape_cast %118 : vector<2x16x128xbf16> to vector<32x128xbf16>
    %cst_49 = arith.constant 0.000000e+00 : bf16
    %120 = vector.broadcast %cst_49 : bf16 to vector<32x128xbf16>
    %121 = arith.cmpf oge, %119, %120 : vector<32x128xbf16>
    %cst_50 = arith.constant 1.000980e-01 : bf16
    %122 = vector.broadcast %cst_50 : bf16 to vector<32x128xbf16>
    %123 = arith.mulf %119, %122 : vector<32x128xbf16>
    %124 = arith.select %121, %119, %123 : vector<32x128xi1>, vector<32x128xbf16>
    %c1 = arith.constant 1 : index
    %c0_51 = arith.constant 0 : index
    %c0_52 = arith.constant 0 : index
    %125 = vector.load %arg15[%c1, %c0_51, %c0_52] : memref<2x128x128xbf16, #tpu.memory_space<vmem>>, vector<1x128x128xbf16>
    %126 = vector.shape_cast %125 : vector<1x128x128xbf16> to vector<128x128xbf16>
    %cst_53 = arith.constant dense<0.000000e+00> : vector<32x128xf32>
    %127 = tpu.matmul %124, %126, %cst_53 {dimension_numbers = #tpu.dot_dimension_numbers<[1], [0], [0], [1], [0, 0, 1, 1], [], []>} : vector<32x128xbf16>, vector<128x128xbf16>, vector<32x128xf32> -> vector<32x128xf32>
    %128 = arith.truncf %127 : vector<32x128xf32> to vector<32x128xbf16>
    %c1_54 = arith.constant 1 : index
    %c0_55 = arith.constant 0 : index
    %c0_56 = arith.constant 0 : index
    %129 = vector.load %arg14[%c1_54, %c0_55, %c0_56] : memref<2x32x128xbf16, #tpu.memory_space<vmem>>, vector<1x32x128xbf16>
    %130 = vector.shape_cast %129 : vector<1x32x128xbf16> to vector<32x128xbf16>
    %131 = arith.addf %128, %130 : vector<32x128xbf16>
    %c0_57 = arith.constant 0 : index
    %c0_58 = arith.constant 0 : index
    %132 = vector.load %arg16[%c0_57, %c0_58] : memref<128x128xbf16, #tpu.memory_space<vmem>>, vector<128x128xbf16>
    %cst_59 = arith.constant dense<0.000000e+00> : vector<32x128xf32>
    %133 = tpu.matmul %131, %132, %cst_59 {dimension_numbers = #tpu.dot_dimension_numbers<[1], [0], [0], [1], [0, 0, 1, 1], [], []>} : vector<32x128xbf16>, vector<128x128xbf16>, vector<32x128xf32> -> vector<32x128xf32>
    %c0_60 = arith.constant 0 : index
    %c0_61 = arith.constant 0 : index
    %134 = vector.load %arg17[%c0_60, %c0_61] : memref<1x128xf32, #tpu.memory_space<vmem>>, vector<1x128xf32>
    %135 = vector.broadcast %134 : vector<1x128xf32> to vector<32x128xf32>
    %136 = arith.addf %133, %135 : vector<32x128xf32>
    %c0_62 = arith.constant 0 : index
    %c0_63 = arith.constant 0 : index
    %137 = vector.load %arg18[%c0_62, %c0_63] : memref<32x128xf32, #tpu.memory_space<vmem>>, vector<32x128xf32>
    tpu.vector_store %arg18[%c0_62, %c0_63], %136 {strides = array<i32>} : memref<32x128xf32, #tpu.memory_space<vmem>>, vector<32x128xf32>,
    return
  }
}

</mosaic_0001>

<bundles_post_ra>
// kernel: forward.1
= control target key start
LH: loop header
LB: loop body
LE: loop exit
PB: predicated region body
PF: predicated region fallthrough
CT: control target
= control target key end

     0   :  { %s2449_s0 = inlined_call_operand.vmem [shape: bf16[16,64], index: 0, kind: input, shape index: {}]   ;;  %s2450_s1 = inlined_call_operand.vmem [shape: f32[2,4], index: 1, kind: input, shape index: {}]   ;;  %s2451_s2 = inlined_call_operand.hbm [shape: f32[2,16], index: 2, kind: input, shape index: {}]   ;;  %s2452_s3 = inlined_call_operand.vmem [shape: f32[1,16], index: 3, kind: input, shape index: {}]   ;;  %s2453_s4 = inlined_call_operand.hbm [shape: f32[1,16], index: 4, kind: input, shape index: {}]   ;;  %s2454_s5 = inlined_call_operand.hbm [shape: f32[16,128], index: 5, kind: input, shape index: {}]   ;;  %s2455_s6 = inlined_call_operand.hbm [shape: f32[16,128], index: 6, kind: input, shape index: {}]   ;;  %s2456_s7 = inlined_call_operand.hbm [shape: f32[16,128], index: 7, kind: input, shape index: {}]   ;;  %s2457_s8 = inlined_call_operand.hbm [shape: f32[16,128], index: 8, kind: input, shape index: {}]   ;;  %s2458_s9 = inlined_call_operand.vmem [shape: bf16[64,128], index: 9, kind: input, shape index: {}]   ;;  %s2459_s10 = inlined_call_operand.hbm [shape: bf16[64,128], index: 10, kind: input, shape index: {}]   ;;  %s2460_s11 = inlined_call_operand.hbm [shape: f32[1,128], index: 11, kind: input, shape index: {}]   ;;  %s2461_s12 = inlined_call_operand.vmem [shape: bf16[128,128], index: 12, kind: input, shape index: {}]   ;;  %s2462_s13 = inlined_call_operand.vmem [shape: f32[2,2,128], index: 13, kind: input, shape index: {}]   ;;  %s2463_s14 = inlined_call_operand.vmem [shape: bf16[2,32,128], index: 14, kind: input, shape index: {}]   ;;  %s2464_s15 = inlined_call_operand.vmem [shape: bf16[2,128,128], index: 15, kind: input, shape index: {}]   ;;  %s2465_s16 = inlined_call_operand.hbm [shape: bf16[128,128], index: 16, kind: input, shape index: {}]   ;;  %s2466_s17 = inlined_call_operand.hbm [shape: f32[1,128], index: 17, kind: input, shape index: {}]   ;;  %s2467_s18 = inlined_call_operand.vmem [shape: f32[32,128], index: 18, kind: output, shape index: {}]  }
   0x1   :  { %2469 = sst [smem:[#allocation24_spill]] %s2449_s0 }
   0x2   :  { %2470 = sst [smem:[#allocation25_spill]] %s2450_s1 }
   0x3   :  { %2471 = sst [smem:[#allocation26_spill]] %s2451_s2 }
   0x4   :  { %23 = vsyncpa [#allocation3], 0 }
   0x5   :  { %24 = vsyncpa [#allocation5], 0 }
   0x6   :  { %25 = vsyncpa [#allocation8], 0 }
   0x7   :  { %26 = vsyncpa [#allocation11], 0 }
   0x8   :  { %27 = vsyncpa [#allocation14], 0 }
   0x9   :  { %28 = vsyncpa [#allocation17], 0  ;;  %s2020_s27 = smov [#allocation4]   ;;  %s1788_s0 = scalar_lea.hbm %s2453_s4, 16 }
   0xa   :  { %s51_s28 = sshll.u32 %s2020_s27, 4  ;;  %p1789_p0 = scmp.ne.s32.totalorder %s2453_s4, %s1788_s0  ;;  %s52_s28 = int_to_ptr.vmem [resolvable:$true] %s51_s28 }
   0xb   :  { %p1792_p1 = scmp.lt.u32.totalorder %s1788_s0, %s2453_s4 }
   0xd   :  { %p1794_p2 = pnand %p1792_p1, %p1789_p0 }
   0xf   :  { %1797 = shalt.err (!%p1794_p2)
}
  0x10   :  { %s1798_s22 = scalar_lea.vmem %s52_s28, 16  ;;  %s1802_s2 = scalar_lea.vmem %s52_s28, 32 }
  0x11   :  { %p1799_p3 = scmp.ne.s32.totalorder %s52_s28, %s1798_s22  ;;  %p1803_p4 = scmp.lt.s32.totalorder %s52_s28, %s52_s28 }
  0x12   :  { %p1804_p5 = scmp.lt.s32.totalorder %s1802_s2, %s1798_s22 }
  0x14   :  { %p1805_p6 = por %p1804_p5, %p1803_p4 }
  0x16   :  { %p1806_p7 = pnand %p1805_p6, %p1799_p3 }
  0x18   :  { %1809 = shalt.err (!%p1806_p7)
}
  0x19   :  { %54 = dma.hbm_to_vmem [thread:$0]  %s2453_s4, 16, %s52_s28, [#allocation5]  }
  0x1a   :  { %s2021_s25 = smov [#allocation7]   ;;  %s2022_s27 = smov [#allocation10]  }
  0x1b   :  { %s72_s26 = sshll.u32 %s2021_s25, 4  ;;  %s96_s29 = sshll.u32 %s2022_s27, 4  ;;  %s73_s26 = int_to_ptr.vmem [resolvable:$true] %s72_s26  ;;  %s97_s29 = int_to_ptr.vmem [resolvable:$true] %s96_s29 }
  0x1c   :  { %s1810_s19 = scalar_lea.hbm %s2455_s6, 256 }
  0x1d   :  { %p1811_p8 = scmp.ne.s32.totalorder %s2455_s6, %s1810_s19  ;;  %p1814_p9 = scmp.lt.u32.totalorder %s1810_s19, %s2455_s6 }
  0x1f   :  { %p1816_p10 = pnand %p1814_p9, %p1811_p8 }
  0x21   :  { %1819 = shalt.err (!%p1816_p10)
}
  0x22   :  { %s1820_s4 = scalar_lea.vmem %s73_s26, 256  ;;  %p1825_p12 = scmp.lt.s32.totalorder %s73_s26, %s73_s26 }
  0x23   :  { %p1821_p11 = scmp.ne.s32.totalorder %s73_s26, %s1820_s4  ;;  %p1826_p13 = scmp.lt.s32.totalorder %s1820_s4, %s1820_s4 }
  0x25   :  { %p1827_p0 = por %p1826_p13, %p1825_p12 }
  0x27   :  { %p1828_p1 = pnand %p1827_p0, %p1821_p11 }
  0x29   :  { %1831 = shalt.err (!%p1828_p1)
}
  0x2a   :  { %s2023_s28 = smov 128   ;;  %s2024_s2 = smov 8  }
  0x2b   :  { %78 = dma.hbm_to_vmem [thread:$0]  %s2455_s6, 256, %s73_s26, [#allocation8], %s2023_s28, %s2023_s28, %s2024_s2  }
  0x2c   :  { %s1832_s30 = scalar_lea.hbm %s2457_s8, 256 }
  0x2d   :  { %p1833_p2 = scmp.ne.s32.totalorder %s2457_s8, %s1832_s30  ;;  %p1836_p3 = scmp.lt.u32.totalorder %s1832_s30, %s2457_s8 }
  0x2f   :  { %p1838_p4 = pnand %p1836_p3, %p1833_p2 }
  0x31   :  { %1841 = shalt.err (!%p1838_p4)
}
  0x32   :  { %s1842_s21 = scalar_lea.vmem %s97_s29, 256  ;;  %p1847_p6 = scmp.lt.s32.totalorder %s97_s29, %s97_s29 }
  0x33   :  { %p1843_p5 = scmp.ne.s32.totalorder %s97_s29, %s1842_s21  ;;  %p1848_p7 = scmp.lt.s32.totalorder %s1842_s21, %s1842_s21 }
  0x35   :  { %p1849_p8 = por %p1848_p7, %p1847_p6 }
  0x37   :  { %p1850_p9 = pnand %p1849_p8, %p1843_p5 }
  0x39   :  { %1853 = shalt.err (!%p1850_p9)
}
  0x3a   :  { %102 = dma.hbm_to_vmem [thread:$0]  %s2457_s8, 256, %s97_s29, [#allocation11], %s2023_s28, %s2023_s28, %s2024_s2  }
  0x3b   :  { %s2025_s22 = smov [#allocation13]   ;;  %s2026_s23 = smov [#allocation2]  }
  0x3c   :  { %s123_s4 = sshll.u32 %s2025_s22, 4  ;;  %s39_s24 = sshll.u32 %s2026_s23, 4  ;;  %s124_s4 = int_to_ptr.vmem [resolvable:$true] %s123_s4  ;;  %s40_s24 = int_to_ptr.vmem [resolvable:$true] %s39_s24 }
  0x3d   :  { %s1854_s30 = scalar_lea.hbm %s2460_s11, 16 }
  0x3e   :  { %p1855_p10 = scmp.ne.s32.totalorder %s2460_s11, %s1854_s30  ;;  %p1858_p11 = scmp.lt.u32.totalorder %s1854_s30, %s2460_s11 }
  0x40   :  { %p1860_p12 = pnand %p1858_p11, %p1855_p10 }
  0x42   :  { %1863 = shalt.err (!%p1860_p12)
}
  0x43   :  { %s1864_s8 = scalar_lea.vmem %s124_s4, 16  ;;  %s1868_s29 = scalar_lea.vmem %s124_s4, 32 }
  0x44   :  { %p1865_p13 = scmp.ne.s32.totalorder %s124_s4, %s1864_s8  ;;  %p1869_p0 = scmp.lt.s32.totalorder %s124_s4, %s124_s4 }
  0x45   :  { %p1870_p1 = scmp.lt.s32.totalorder %s1868_s29, %s1864_s8 }
  0x47   :  { %p1871_p2 = por %p1870_p1, %p1869_p0 }
  0x49   :  { %p1872_p3 = pnand %p1871_p2, %p1865_p13 }
  0x4b   :  { %1875 = shalt.err (!%p1872_p3)
}
  0x4c   :  { %126 = dma.hbm_to_vmem [thread:$0]  %s2460_s11, 16, %s124_s4, [#allocation14]  }
  0x4d   :  { %s2472_s23 = sld [smem:[#allocation26_spill]] }
  0x53   :  { %s1876_s25 = scalar_lea.hbm %s2472_s23, 32 }
  0x54   :  { %p1877_p4 = scmp.ne.s32.totalorder %s2472_s23, %s1876_s25  ;;  %p1880_p5 = scmp.lt.u32.totalorder %s1876_s25, %s2472_s23 }
  0x56   :  { %p1882_p6 = pnand %p1880_p5, %p1877_p4 }
  0x58   :  { %1885 = shalt.err (!%p1882_p6)
}
  0x59   :  { %s1886_s1 = scalar_lea.vmem %s40_s24, 32  ;;  %p1891_p8 = scmp.lt.s32.totalorder %s40_s24, %s40_s24 }
  0x5a   :  { %p1887_p7 = scmp.ne.s32.totalorder %s40_s24, %s1886_s1  ;;  %p1892_p9 = scmp.lt.s32.totalorder %s1886_s1, %s1886_s1 }
  0x5c   :  { %p1893_p10 = por %p1892_p9, %p1891_p8 }
  0x5e   :  { %p1894_p11 = pnand %p1893_p10, %p1887_p7 }
  0x60   :  { %1897 = shalt.err (!%p1894_p11)
}
  0x61   :  { %42 = dma.hbm_to_vmem [thread:$0]  %s2472_s23, 32, %s40_s24, [#allocation3]  }
  0x62   :  { %s2027_s20 = smov [#allocation6]   ;;  %s2028_s29 = smov [#allocation9]  }
  0x63   :  { %s60_s8 = sshll.u32 %s2027_s20, 4  ;;  %s84_s21 = sshll.u32 %s2028_s29, 4  ;;  %s61_s8 = int_to_ptr.vmem [resolvable:$true] %s60_s8  ;;  %s85_s21 = int_to_ptr.vmem [resolvable:$true] %s84_s21 }
  0x64   :  { %s1898_s22 = scalar_lea.hbm %s2454_s5, 256 }
  0x65   :  { %p1899_p12 = scmp.ne.s32.totalorder %s2454_s5, %s1898_s22  ;;  %p1902_p13 = scmp.lt.u32.totalorder %s1898_s22, %s2454_s5 }
  0x67   :  { %p1904_p0 = pnand %p1902_p13, %p1899_p12 }
  0x69   :  { %1907 = shalt.err (!%p1904_p0)
}
  0x6a   :  { %s1908_s24 = scalar_lea.vmem %s61_s8, 256  ;;  %p1913_p2 = scmp.lt.s32.totalorder %s61_s8, %s61_s8 }
  0x6b   :  { %p1909_p1 = scmp.ne.s32.totalorder %s61_s8, %s1908_s24  ;;  %p1914_p3 = scmp.lt.s32.totalorder %s1908_s24, %s1908_s24 }
  0x6d   :  { %p1915_p4 = por %p1914_p3, %p1913_p2 }
  0x6f   :  { %p1916_p5 = pnand %p1915_p4, %p1909_p1 }
  0x71   :  { %1919 = shalt.err (!%p1916_p5)
}
  0x72   :  { %66 = dma.hbm_to_vmem [thread:$0]  %s2454_s5, 256, %s61_s8, [#allocation5], %s2023_s28, %s2023_s28, %s2024_s2  }
  0x73   :  { %s1920_s4 = scalar_lea.hbm %s2456_s7, 256 }
  0x74   :  { %p1921_p6 = scmp.ne.s32.totalorder %s2456_s7, %s1920_s4  ;;  %p1924_p7 = scmp.lt.u32.totalorder %s1920_s4, %s2456_s7 }
  0x76   :  { %p1926_p8 = pnand %p1924_p7, %p1921_p6 }
  0x78   :  { %1929 = shalt.err (!%p1926_p8)
}
  0x79   :  { %s1930_s22 = scalar_lea.vmem %s85_s21, 256  ;;  %p1935_p10 = scmp.lt.s32.totalorder %s85_s21, %s85_s21 }
  0x7a   :  { %p1931_p9 = scmp.ne.s32.totalorder %s85_s21, %s1930_s22  ;;  %p1936_p11 = scmp.lt.s32.totalorder %s1930_s22, %s1930_s22 }
  0x7c   :  { %p1937_p12 = por %p1936_p11, %p1935_p10 }
  0x7e   :  { %p1938_p13 = pnand %p1937_p12, %p1931_p9 }
  0x80   :  { %1941 = shalt.err (!%p1938_p13)
}
  0x81   :  { %90 = dma.hbm_to_vmem [thread:$0]  %s2456_s7, 256, %s85_s21, [#allocation8], %s2023_s28, %s2023_s28, %s2024_s2  }
  0x82   :  { %s2029_s25 = smov [#allocation12]   ;;  %s1942_s24 = scalar_lea.hbm %s2459_s10, 512 }
  0x83   :  { %s110_s27 = sshll.u32 %s2029_s25, 4  ;;  %p1943_p0 = scmp.ne.s32.totalorder %s2459_s10, %s1942_s24  ;;  %s111_s27 = int_to_ptr.vmem [resolvable:$true] %s110_s27 }
  0x84   :  { %p1946_p1 = scmp.lt.u32.totalorder %s1942_s24, %s2459_s10 }
  0x86   :  { %p1948_p2 = pnand %p1946_p1, %p1943_p0 }
  0x88   :  { %1951 = shalt.err (!%p1948_p2)
}
  0x89   :  { %s1952_s4 = scalar_lea.vmem %s111_s27, 512  ;;  %p1957_p4 = scmp.lt.s32.totalorder %s111_s27, %s111_s27 }
  0x8a   :  { %p1953_p3 = scmp.ne.s32.totalorder %s111_s27, %s1952_s4  ;;  %p1958_p5 = scmp.lt.s32.totalorder %s1952_s4, %s1952_s4 }
  0x8c   :  { %p1959_p6 = por %p1958_p5, %p1957_p4 }
  0x8e   :  { %p1960_p7 = pnand %p1959_p6, %p1953_p3 }
  0x90   :  { %1963 = shalt.err (!%p1960_p7)
}
  0x91   :  { %s2030_s7 = smov 64   ;;  %s2031_s28 = smov 4  }
  0x92   :  { %116 = dma.hbm_to_vmem [thread:$0]  %s2459_s10, 512, %s111_s27, [#allocation11], %s2030_s7, %s2030_s7, %s2031_s28  }
  0x93   :  { %s2032_s20 = smov [#allocation15]   ;;  %s2033_s6 = smov [#allocation16]  }
  0x94   :  { %s140_s29 = sshll.u32 %s2032_s20, 4  ;;  %s153_s26 = sshll.u32 %s2033_s6, 4  ;;  %s141_s29 = int_to_ptr.vmem [resolvable:$true] %s140_s29  ;;  %s154_s26 = int_to_ptr.vmem [resolvable:$true] %s153_s26 }
  0x95   :  { %s1964_s8 = scalar_lea.hbm %s2465_s16, 1024 }
  0x96   :  { %p1965_p8 = scmp.ne.s32.totalorder %s2465_s16, %s1964_s8  ;;  %p1968_p9 = scmp.lt.u32.totalorder %s1964_s8, %s2465_s16 }
  0x98   :  { %p1970_p10 = pnand %p1968_p9, %p1965_p8 }
  0x9a   :  { %1973 = shalt.err (!%p1970_p10)
}
  0x9b   :  { %s1974_s10 = scalar_lea.vmem %s141_s29, 1024  ;;  %p1979_p12 = scmp.lt.s32.totalorder %s141_s29, %s141_s29 }
  0x9c   :  { %p1975_p11 = scmp.ne.s32.totalorder %s141_s29, %s1974_s10  ;;  %p1980_p13 = scmp.lt.s32.totalorder %s1974_s10, %s1974_s10 }
  0x9e   :  { %p1981_p0 = por %p1980_p13, %p1979_p12 }
  0xa0   :  { %p1982_p1 = pnand %p1981_p0, %p1975_p11 }
  0xa2   :  { %1985 = shalt.err (!%p1982_p1)
}
  0xa3   :  { %146 = dma.hbm_to_vmem [thread:$0]  %s2465_s16, 1024, %s141_s29, [#allocation14], %s2030_s7, %s2030_s7, %s2031_s28  }
  0xa4   :  { %s1986_s11 = scalar_lea.hbm %s2466_s17, 16 }
  0xa5   :  { %p1987_p2 = scmp.ne.s32.totalorder %s2466_s17, %s1986_s11  ;;  %p1990_p3 = scmp.lt.u32.totalorder %s1986_s11, %s2466_s17 }
  0xa7   :  { %p1992_p4 = pnand %p1990_p3, %p1987_p2 }
  0xa9   :  { %1995 = shalt.err (!%p1992_p4)
}
  0xaa   :  { %s1996_s6 = scalar_lea.vmem %s154_s26, 16  ;;  %s2000_s22 = scalar_lea.vmem %s154_s26, 32 }
  0xab   :  { %p1997_p5 = scmp.ne.s32.totalorder %s154_s26, %s1996_s6  ;;  %p2001_p6 = scmp.lt.s32.totalorder %s154_s26, %s154_s26 }
  0xac   :  { %p2002_p7 = scmp.lt.s32.totalorder %s2000_s22, %s1996_s6 }
  0xae   :  { %p2003_p8 = por %p2002_p7, %p2001_p6 }
  0xb0   :  { %p2004_p9 = pnand %p2003_p8, %p1997_p5 }
  0xb2   :  { %2007 = shalt.err (!%p2004_p9)
}
  0xb3   :  { %156 = dma.hbm_to_vmem [thread:$0]  %s2466_s17, 16, %s154_s26, [#allocation17]  }
  0xb4   :  { %2008 = dma.done.wait [#allocation3], 32  }
  0xb5   :  { %2009 = vsyncadd [#allocation3], 4294967264 }
  0xb6   :  { %2010 = dma.done.wait [#allocation5], 272  }
  0xb7   :  { %2011 = vsyncadd [#allocation5], 4294967024 }
  0xb8   :  { %2012 = dma.done.wait [#allocation8], 512  }
  0xb9   :  { %2013 = vsyncadd [#allocation8], 4294966784 }
  0xba   :  { %2014 = dma.done.wait [#allocation11], 768  }
  0xbb   :  { %2015 = vsyncadd [#allocation11], 4294966528 }
  0xbc   :  { %2016 = dma.done.wait [#allocation14], 1040  }
  0xbd   :  { %2017 = vsyncadd [#allocation14], 4294966256 }
  0xbe   :  { %2018 = dma.done.wait [#allocation17], 16  }
  0xbf   :  { %2019 = vsyncadd [#allocation17], 4294967280  ;;  %v2034_v0 = vmov 3   ;;  %v2035_v1 = vmov 2   ;;  %s2473_s5 = sld [smem:[#allocation25_spill]]  ;;  %s2036_s17 = smov 127   ;;  %v198_v8 = vlaneseq }
  0xc0   :  { %1730 = vset.pattern.permute.xlu1 %v2034_v0  ;;  %1729 = vset.pattern.permute.xlu0 %v2035_v1  ;;  %v2037_v4 = vmov 1   ;;  %v2038_v7 = vmov 0   ;;  %v189_v12 = vld [vmem:[#allocation2] sm:$0x3]  ;;  %v1417_v25 = vld [vmem:[#allocation4] ss:$0 sm:$0xff] }
  0xc1   :  { %v2273_v9 = vshrl.u32 %v198_v8, 7  ;;  %v1416_v20 = vld [vmem:[%s2452_s3] ss:$0 sm:$0xff]  ;;  %vm242_vm0 = vcmask 123904   ;;  %v276_v43 = vld [vmem:[#allocation7] sm:$0xff]  ;;  %v2039_v48 = vmov 0.0|0.0  }
  0xc2   :  { %v277_v44 = vld [vmem:[#allocation7 + $0x8] sm:$0xff]  ;;  %v427_v45 = vld [vmem:[#allocation10] sm:$0xff]  ;;  %1692 = vmatprep.subr.bf16.mxu0 %v2039_v48  ;;  %1698 = vmatprep.subr.bf16.mxu1 %v2039_v48  ;;  %vm2040_vm1 = vmmov 0   ;;  %v2041_v50 = vmov 0.0   ;;  %v274_v52 = vld [vmem:[#allocation6] sm:$0xff]  ;;  %vm278_vm2 = vcmask 130048  }
  0xc3   :  { %v2276_v10 = vsub.s32 0, %v2273_v9  ;;  %v209_v11 = vsub.s32 1, %v2273_v9  ;;  %v1693_v46 = vpack.c.bf16 %v277_v44, %v276_v43  ;;  %v428_v47 = vld [vmem:[#allocation10 + $0x8] sm:$0xff]  ;;  %1564 = vmatprep.mubr.msk.f32.mxu0 %vm2040_vm1, %v2041_v50  ;;  %1578 = vmatprep.mubr.msk.f32.mxu1 %vm2040_vm1, %v2041_v50  ;;  %v275_v53 = vld [vmem:[#allocation6 + $0x8] sm:$0xff]  ;;  %v425_v54 = vld [vmem:[#allocation9] sm:$0xff]  ;;  %s2474_s11 = sld [smem:[#allocation24_spill]] }
  0xc4   :  { %v1699_v49 = vpack.c.bf16 %v428_v47, %v427_v45  ;;  %v426_v55 = vld [vmem:[#allocation9 + $0x8] sm:$0xff]  ;;  %v1696_v58 = vpack.c.bf16 %v275_v53, %v274_v52  ;;  %v1735_v62 = vld [vmem:[%s2458_s9] sm:$0xff]   ;;  %vm608_vm3 = vcmask 523264  }
  0xc5   :  { %v192_v2 = vld [vmem:[%s2473_s5] sm:$0x3]  ;;  %v210_v13 = vrot.slane %v189_v12, %v209_v11  ;;  %v201_v14 = vrot.slane %v189_v12, %v2276_v10  ;;  %1694 = vmatpush3.bf16.msra.mxu0 %v1693_v46  ;;  %v1702_v59 = vpack.c.bf16 %v426_v55, %v425_v54  ;;  %v1736_v63 = vld [vmem:[#allocation12] sm:$0xff]  }
  0xc6   :  { %v213_v3 = vmul.f32 %v192_v2, %v192_v2  ;;  %254 = vperm.xlu1 %1730, %v192_v2   ;;  %1700 = vmatpush3.bf16.msra.mxu1 %v1699_v49  ;;  %v1744_v8 = vld [vmem:[%s2461_s12] sm:$0xff]   ;;  %v1746_v12 = vld [vmem:[%s2461_s12 + $0x8] sm:$0xff]  }
  0xc7   :  { %1695 = vmatprep.subr.bf16.mxu0 %v2039_v48  ;;  %1701 = vmatprep.subr.bf16.mxu1 %v2039_v48  ;;  %v1745_v11 = vld [vmem:[%s2464_s15] sm:$0xff]  }
  0xc8   :  { %215 = vrot.lane.b32.xlu0 %v213_v3, %s2036_s17 }
  0xca   :  { %1731 = vset.pattern.permute.xlu1 %v2035_v1 }
  0xcc   :  { %249 = vperm.xlu0 %1729, %v192_v2  }
  0xd0   :  { %1733 = vset.pattern.permute.xlu0 %v2037_v4  ;;  %v1740_v4 = vld [vmem:[#allocation12 + $0x10] sm:$0xff]  }
  0xd1   :  { %204 = vperm.xlu0 %1733, %v192_v2  }
  0xd5   :  { %1734 = vset.pattern.permute.xlu0 %v2035_v1  ;;  %v1737_v1 = vld [vmem:[%s2458_s9 + $0x8] sm:$0xff]  }
 0x13a   :  { %v216_v5 = vpop.permute.xlu0 %215 }
 0x13b   :  { %v218_v6 = vadd.f32 %v216_v5, %v213_v3  ;;  %v1739_v3 = vld [vmem:[%s2458_s9 + $0x10] sm:$0xff]   ;;  %v1741_v5 = vld [vmem:[%s2458_s9 + $0x18] sm:$0xff]  }
 0x13d   :  { %260 = vperm.xlu1 %1731, %v218_v6  }
 0x141   :  { %1732 = vset.pattern.permute.xlu1 %v2038_v7  ;;  %v1743_v7 = vld [vmem:[%s2474_s11] sm:$0xff]  }
 0x142   :  { %195 = vperm.xlu1 %1732, %v192_v2   ;;  %v1738_v2 = vld [vmem:[#allocation12 + $0x8] sm:$0xff]  }
 0x145   :  { %v255_v15 = vpop.permute.xlu1 %254 }
 0x146   :  { %221 = vperm.xlu1 %1732, %v218_v6   ;;  %v257_v17 = vmul.f32 %v255_v15, %v210_v13  ;;  %v1742_v6 = vld [vmem:[#allocation12 + $0x18] sm:$0xff]   ;;  %v1749_v15 = vld [vmem:[%s2464_s15 + $0x10] sm:$0xff]  }
 0x14b   :  { %v250_v16 = vpop.permute.xlu0 %249 }
 0x14c   :  { %v252_v18 = vmul.f32 %v250_v16, %v201_v14  ;;  %v1750_v16 = vld [vmem:[%s2461_s12 + $0x18] sm:$0xff]  }
 0x14e   :  { %v258_v19 = vadd.f32 %v257_v17, %v252_v18  ;;  %v1751_v17 = vld [vmem:[%s2464_s15 + $0x18] sm:$0xff]   ;;  %v1752_v18 = vld [vmem:[%s2461_s12 + $0x20] sm:$0xff]  }
 0x150   :  { %v264_v21 = vmul.f32 2.0, %v258_v19  ;;  %v205_v24 = vpop.permute.xlu0 %204  ;;  %v1753_v19 = vld [vmem:[%s2464_s15 + $0x20] sm:$0xff]  }
 0x151   :  { %v211_v27 = vmul.f32 %v210_v13, %v205_v24  ;;  %v1747_v13 = vld [vmem:[%s2464_s15 + $0x8] sm:$0xff]   ;;  %v1758_v24 = vld [vmem:[%s2461_s12 + $0x38] sm:$0xff]  }
 0x1bc   :  { %v261_v22 = vpop.permute.xlu1 %260 }
 0x1bd   :  { %v263_v23 = vadd.f32 %v1416_v20, %v261_v22  ;;  %v1756_v22 = vld [vmem:[%s2461_s12 + $0x30] sm:$0xff]  }
 0x1bf   :  { %v265_v26 = vsub.f32 %v263_v23, %v264_v21  ;;  %v1755_v21 = vld [vmem:[%s2464_s15 + $0x28] sm:$0xff]   ;;  %v1757_v23 = vld [vmem:[%s2464_s15 + $0x30] sm:$0xff]  }
 0x1c1   :  { %v266_v28 = vmul.f32 %v1417_v25, %v265_v26  ;;  %v196_v29 = vpop.permute.xlu1 %195  ;;  %v2383_v26 = vld [vmem:[%s2464_s15 + $0x40] sm:$0xff]  }
 0x1c2   :  { %v202_v30 = vmul.f32 %v201_v14, %v196_v29  ;;  %v1748_v14 = vld [vmem:[%s2461_s12 + $0x10] sm:$0xff]   ;;  %v2042_v29 = vmov 1966171168  }
 0x1c3   :  { %v267_v31 = vmul.f32 1.442695, %v266_v28 }
 0x1c4   :  { %v212_v32 = vadd.f32 %v211_v27, %v202_v30  ;;  %v663_v30 = vunpack.c.l.s4 %v2042_v29 }
 0x1c5   :  { %1780 = vpow2.f32 %v267_v31  ;;  %v222_v33 = vpop.permute.xlu1 %221 }
 0x1c6   :  { %v231_v34 = vmul.f32 2.0, %v212_v32  ;;  %v230_v35 = vadd.f32 %v1416_v20, %v222_v33  ;;  %v1754_v20 = vld [vmem:[%s2461_s12 + $0x28] sm:$0xff]   ;;  %v664_v31 = vunpack.c.0.s8 %v663_v30  ;;  %v653_v32 = vld [vmem:[%s2462_s13] sm:$0x3]  ;;  %v654_v33 = vld [vmem:[%s2462_s13 + $0x2] sm:$0x3] }
 0x1c8   :  { %v232_v36 = vsub.f32 %v230_v35, %v231_v34 }
 0x1ca   :  { %v239_v37 = vmul.f32 %v1417_v25, %v232_v36  ;;  %v1759_v25 = vld [vmem:[%s2464_s15 + $0x38] sm:$0xff]   ;;  %v1437_v36 = vld [vmem:[#allocation13] ss:$0 sm:$0xff] }
 0x1cc   :  { %v240_v38 = vmul.f32 1.442695, %v239_v37  ;;  %v667_v37 = vsub.s32 %v664_v31, %v2273_v9 }
 0x1ce   :  { %1782 = vpow2.f32 %v240_v38 }
 0x1cf   :  { %v1781_v39 = vpop.eup %1780 }
 0x1d0   :  { %v269_v40 = vsel %vm242_vm0, %v1781_v39, 0.0 }
 0x1d1   :  { %270 = vadd.xlane.f32.xlu1 %v269_v40 }
 0x1d8   :  { %v1783_v41 = vpop.eup %1782 }
 0x1d9   :  { %v243_v42 = vsel %vm242_vm0, %v1783_v41, 0.0 }
 0x1da   :  { %244 = vadd.xlane.f32.xlu0 %v243_v42 }
 0x25e   :  { %v271_v51 = vpop.xlane.xlu1 %270 }
 0x25f   :  { %1784 = vrcp.f32 %v271_v51 }
 0x267   :  { %v245_v56 = vpop.xlane.xlu0 %244 }
 0x268   :  { %1786 = vrcp.f32 %v245_v56 }
 0x269   :  { %v1785_v57 = vpop.eup %1784 }
 0x26a   :  { %v273_v60 = vmul.f32 %v1785_v57, %v1781_v39 }
 0x26c   :  { %1565 = vmatmul.mubr.msk.f32.vlgmr.msra.gmra.mrb[0].mxu0 %vm278_vm2, %v273_v60  ;;  %1579 = vmatmul.mubr.msk.f32.vlgmr.msra.gmra.mrb[0].mxu1 %vm278_vm2, %v273_v60 }
 0x26d   :  { %1697 = vmatpush3.bf16.msra.mxu0 %v1696_v58  ;;  %1703 = vmatpush3.bf16.msra.mxu1 %v1702_v59 }
 0x26e   :  { %1571 = vmatprep.mubr.msk.f32.mxu0 %vm2040_vm1, %v2041_v50  ;;  %1585 = vmatprep.mubr.msk.f32.mxu1 %vm2040_vm1, %v2041_v50 }
 0x26f   :  { %1588 = vmatprep.subr.bf16.mxu0 %v2041_v50  ;;  %1600 = vmatprep.subr.bf16.mxu1 %v2041_v50 }
 0x272   :  { %v1787_v61 = vpop.eup %1786 }
 0x273   :  { %v247_v0 = vmul.f32 %v1787_v61, %v1783_v41 }
 0x275   :  { %1572 = vmatmul.mubr.msk.f32.vlgmr.msra.gmra.mrb[0].mxu0 %vm278_vm2, %v247_v0  ;;  %1586 = vmatmul.mubr.msk.f32.vlgmr.msra.gmra.mrb[2].mxu1 %vm278_vm2, %v247_v0 }
 0x276   :  { %1589 = vmatpush3.bf16.msra.mxu0 %v1735_v62  ;;  %1601 = vmatpush3.bf16.msra.mxu1 %v1736_v63 }
 0x277   :  { %1590 = vmatprep.subr.bf16.mxu0 %v2041_v50  ;;  %1602 = vmatprep.subr.bf16.mxu1 %v2041_v50 }
 0x278   :  { %1596 = vmatprep.mubr.msk.bf16.mxu0 %vm2040_vm1, %v2041_v50  ;;  %1608 = vmatprep.mubr.msk.bf16.mxu1 %vm2040_vm1, %v2041_v50 }
 0x27a   :  { %1591 = vmatpush3.bf16.msra.mxu0 %v1737_v1  ;;  %1603 = vmatpush3.bf16.msra.mxu1 %v1738_v2 }
 0x27b   :  { %1592 = vmatprep.subr.bf16.mxu0 %v2041_v50  ;;  %1604 = vmatprep.subr.bf16.mxu1 %v2041_v50 }
 0x27e   :  { %1593 = vmatpush3.bf16.msra.mxu0 %v1739_v3  ;;  %1605 = vmatpush3.bf16.msra.mxu1 %v1740_v4 }
 0x27f   :  { %1594 = vmatprep.subr.bf16.mxu0 %v2041_v50  ;;  %1606 = vmatprep.subr.bf16.mxu1 %v2041_v50 }
 0x282   :  { %1595 = vmatpush3.bf16.msra.mxu0 %v1741_v5  ;;  %1607 = vmatpush3.bf16.msra.mxu1 %v1742_v6 }
 0x283   :  { %1612 = vmatprep.subr.bf16.mxu0 %v2041_v50  ;;  %1632 = vmatprep.subr.bf16.mxu1 %v1745_v11 }
 0x285   :  { %1597 = vmatmul.mubr.msk.bf16.vlgmr.msra.gmra.mrb[4].mxu0 %vm608_vm3, %v1743_v7  ;;  %1609 = vmatmul.mubr.msk.bf16.vlgmr.msra.gmra.mrb[4].mxu1 %vm608_vm3, %v1743_v7 }
 0x286   :  { %1628 = vmatprep.mubr.msk.bf16.mxu0 %vm2040_vm1, %v2041_v50  ;;  %1613 = vmatpush3.bf16.msra.mxu0 %v1744_v8 }
 0x287   :  { %1614 = vmatprep.subr.bf16.mxu0 %v2041_v50  ;;  %1633 = vmatpush3.bf16.msra.mxu1 %v1745_v11 }
 0x288   :  { %1634 = vmatprep.subr.bf16.mxu1 %v1747_v13 }
 0x28a   :  { %1615 = vmatpush3.bf16.msra.mxu0 %v1746_v12 }
 0x28b   :  { %1616 = vmatprep.subr.bf16.mxu0 %v2041_v50  ;;  %1635 = vmatpush3.bf16.msra.mxu1 %v1747_v13 }
 0x28c   :  { %1636 = vmatprep.subr.bf16.mxu1 %v1749_v15 }
 0x28e   :  { %1617 = vmatpush3.bf16.msra.mxu0 %v1748_v14 }
 0x28f   :  { %1618 = vmatprep.subr.bf16.mxu0 %v2041_v50  ;;  %1637 = vmatpush3.bf16.msra.mxu1 %v1749_v15 }
 0x290   :  { %1638 = vmatprep.subr.bf16.mxu1 %v1751_v17 }
 0x292   :  { %1619 = vmatpush3.bf16.msra.mxu0 %v1750_v16 }
 0x293   :  { %1620 = vmatprep.subr.bf16.mxu0 %v2041_v50  ;;  %1639 = vmatpush3.bf16.msra.mxu1 %v1751_v17 }
 0x294   :  { %1640 = vmatprep.subr.bf16.mxu1 %v1753_v19 }
 0x296   :  { %1621 = vmatpush3.bf16.msra.mxu0 %v1752_v18 }
 0x297   :  { %1622 = vmatprep.subr.bf16.mxu0 %v2041_v50  ;;  %1641 = vmatpush3.bf16.msra.mxu1 %v1753_v19 }
 0x298   :  { %1642 = vmatprep.subr.bf16.mxu1 %v1755_v21 }
 0x29a   :  { %1623 = vmatpush3.bf16.msra.mxu0 %v1754_v20 }
 0x29b   :  { %1624 = vmatprep.subr.bf16.mxu0 %v2041_v50  ;;  %1643 = vmatpush3.bf16.msra.mxu1 %v1755_v21 }
 0x29c   :  { %1644 = vmatprep.subr.bf16.mxu1 %v1757_v23 }
 0x29e   :  { %1625 = vmatpush3.bf16.msra.mxu0 %v1756_v22 }
 0x29f   :  { %1626 = vmatprep.subr.bf16.mxu0 %v2041_v50  ;;  %1645 = vmatpush3.bf16.msra.mxu1 %v1757_v23 }
 0x2a0   :  { %1646 = vmatprep.subr.bf16.mxu1 %v1759_v25 }
 0x2a2   :  { %1627 = vmatpush3.bf16.msra.mxu0 %v1758_v24 }
 0x2a3   :  { %1647 = vmatpush3.bf16.msra.mxu1 %v1759_v25  ;;  %1652 = vmatprep.subr.bf16.mxu0 %v2383_v26 }
 0x33f   :  { %v495_v27 = vpop.f32.mrb[0].mxu1 }
 0x340   :  { %v1580_v28 = vpop.f32.mrb[1].mxu1 }
 0x348   :  { %v421_v34 = vpop.f32.mrb[0].mxu0  ;;  %v565_v35 = vpop.f32.mrb[2].mxu1 }
 0x349   :  { %v655_v38 = vadd.f32 %v653_v32, %v421_v34  ;;  %v656_v39 = vadd.f32 %v654_v33, %v421_v34  ;;  %v566_v40 = vadd.f32 %v565_v35, %v495_v27  ;;  %v1573_v41 = vpop.f32.mrb[1].mxu0  ;;  %v1587_v42 = vpop.f32.mrb[3].mxu1 }
 0x34b   :  { %v657_v43 = vpack.c.bf16 %v655_v38, %v655_v38  ;;  %v658_v44 = vpack.c.bf16 %v656_v39, %v656_v39  ;;  %v833_v45 = vadd.f32 %v1437_v36, %v566_v40  ;;  %v1761_v40 = vld [vmem:[%s2464_s15 + $0x48] sm:$0xff]  }
 0x34d   :  { %v668_v46 = vrot.slane %v657_v43, %v667_v37  ;;  %v682_v47 = vrot.slane %v658_v44, %v667_v37  ;;  %v841_v48 = vrot.slane %v833_v45, %v667_v37  ;;  %v1762_v43 = vld [vmem:[%s2464_s15 + $0x50] sm:$0xff]   ;;  %v1763_v44 = vld [vmem:[%s2464_s15 + $0x58] sm:$0xff]   ;;  %v1764_v45 = vld [vmem:[%s2464_s15 + $0x60] sm:$0xff]  }
 0x34f   :  { %v675_v49 = vrot.slane %v668_v46, %v667_v37  ;;  %v689_v50 = vrot.slane %v682_v47, %v667_v37  ;;  %v849_v51 = vrot.slane %v841_v48, %v667_v37  ;;  %v842_v52 = vcombine.high %v841_v48, %v841_v48  ;;  %v1768_v46 = vld [vmem:[%s2464_s15 + $0x70] sm:$0xff]   ;;  %v1769_v47 = vld [vmem:[%s2464_s15 + $0x78] sm:$0xff]   ;;  %v1770_v48 = vld [vmem:[#allocation15] sm:$0xff]  }
 0x350   :  { %1672 = vmatprep.subr.bf16.mxu1 %v1770_v48 }
 0x351   :  { %v691_v53 = vunpack.i.h.s16 %v675_v49  ;;  %v693_v54 = vunpack.i.h.s16 %v689_v50  ;;  %v1430_v55 = vpack.i.b16 %v675_v49, %v675_v49  ;;  %v1431_v56 = vpack.i.b16 %v689_v50, %v689_v50  ;;  %v1771_v49 = vld [vmem:[#allocation15 + $0x8] sm:$0xff]   ;;  %v1772_v50 = vld [vmem:[#allocation15 + $0x10] sm:$0xff]  }
 0x352   :  { %v856_v9 = vrot.slane %v842_v52, %v667_v37  ;;  %v860_v1 = vrot.slane %v849_v51, %v2276_v10  ;;  %v1773_v51 = vld [vmem:[#allocation15 + $0x18] sm:$0xff]   ;;  %v1774_v52 = vld [vmem:[#allocation15 + $0x20] sm:$0xff]  }
 0x353   :  { %v702_v57 = vpack.i.b16 %v691_v53, %v691_v53  ;;  %v704_v58 = vpack.i.b16 %v693_v54, %v693_v54  ;;  %v708_v59 = vrot.slane %v1430_v55, %v2276_v10  ;;  %v716_v60 = vrot.slane %v1431_v56, %v2276_v10  ;;  %v1775_v53 = vld [vmem:[#allocation15 + $0x28] sm:$0xff]  }
 0x354   :  { %v864_v18 = vrot.slane %v856_v9, %v2276_v10 }
 0x355   :  { %v722_v61 = vpack.i.b16 %v708_v59, %v708_v59  ;;  %v736_v62 = vpack.i.b16 %v716_v60, %v716_v60  ;;  %v712_v63 = vrot.slane %v702_v57, %v2276_v10  ;;  %v720_v0 = vrot.slane %v704_v58, %v2276_v10  ;;  %v1765_v60 = vld [vmem:[%s2463_s14 + $0x8] sm:$0xff]  }
 0x357   :  { %v727_v2 = vrot.slane %v722_v61, %v2276_v10  ;;  %v741_v3 = vrot.slane %v736_v62, %v2276_v10  ;;  %v729_v4 = vpack.i.b16 %v712_v63, %v712_v63  ;;  %v743_v5 = vpack.i.b16 %v720_v0, %v720_v0  ;;  %v1767_v62 = vld [vmem:[%s2463_s14] sm:$0xff]  }
 0x358   :  { %v646_v6 = vpop.f32.mrb[4].mxu0  ;;  %v819_v7 = vpop.f32.mrb[4].mxu1 }
 0x359   :  { %v1497_v8 = vpack.c.bf16 %v646_v6, %v646_v6  ;;  %v867_v11 = vadd.f32 %v860_v1, %v819_v7  ;;  %v1598_v12 = vpop.f32.mrb[5].mxu0  ;;  %v1610_v13 = vpop.f32.mrb[5].mxu1  ;;  %v734_v15 = vrot.slane %v729_v4, %v2276_v10  ;;  %v748_v16 = vrot.slane %v743_v5, %v2276_v10 }
 0x35a   :  { %v649_v14 = vpop.f32.mrb[6].mxu0  ;;  %v822_v17 = vpop.f32.mrb[6].mxu1  ;;  %v1776_v12 = vld [vmem:[#allocation15 + $0x30] sm:$0xff]   ;;  %v1779_v13 = vld [vmem:[#allocation15 + $0x38] sm:$0xff]  }
 0x35b   :  { %v749_v19 = vadd.bf16 %v1497_v8, %v727_v2  ;;  %v751_v20 = vadd.bf16 %v1497_v8, %v741_v3  ;;  %v1599_v21 = vpop.f32.mrb[7].mxu0  ;;  %v1611_v22 = vpop.f32.mrb[7].mxu1  ;;  %v1498_v23 = vpack.c.bf16 %v649_v14, %v649_v14  ;;  %v868_v24 = vadd.f32 %v864_v18, %v822_v17  ;;  %v1778_v17 = vld [vmem:[%s2463_s14 + $0x10] sm:$0xff]  }
 0x35c   :  { %vm869_vm5 = vcmp.ge.f32.partialorder %v867_v11, 0.0  ;;  %v871_v27 = vmul.f32 0.1, %v867_v11 }
 0x35d   :  { %vm984_vm4 = vcmp.ge.bf16.partialorder %v751_v20, 0  ;;  %v988_v25 = vmul.bf16 1036860877, %v751_v20  ;;  %v986_v28 = vmul.bf16 1036860877, %v749_v19  ;;  %v750_v29 = vadd.bf16 %v1498_v23, %v734_v15 }
 0x35e   :  { %v752_v30 = vadd.bf16 %v1498_v23, %v748_v16  ;;  %vm870_vm6 = vcmp.ge.f32.partialorder %v868_v24, 0.0  ;;  %vm982_vm7 = vcmp.ge.bf16.partialorder %v749_v19, 0  ;;  %v872_v31 = vmul.f32 0.1, %v868_v24 }
 0x35f   :  { %vm983_vm8 = vcmp.ge.bf16.partialorder %v750_v29, 0  ;;  %v987_v32 = vmul.bf16 1036860877, %v750_v29  ;;  %v992_v33 = vsel %vm984_vm4, %v751_v20, %v988_v25  ;;  %v873_v34 = vsel %vm869_vm5, %v867_v11, %v871_v27 }
 0x360   :  { %vm985_vm9 = vcmp.ge.bf16.partialorder %v752_v30, 0  ;;  %v989_v10 = vmul.bf16 1036860877, %v752_v30  ;;  %v874_v35 = vsel %vm870_vm6, %v868_v24, %v872_v31  ;;  %v990_v38 = vsel %vm982_vm7, %v749_v19, %v986_v28  ;;  %v1777_v19 = vld [vmem:[%s2463_s14 + $0x18] sm:$0xff]   ;;  %v1488_v24 = vld [vmem:[#allocation16] ss:$0 sm:$0xff] }
 0x361   :  { %v875_v37 = vpack.c.bf16 %v874_v35, %v873_v34  ;;  %v991_v39 = vsel %vm983_vm8, %v750_v29, %v987_v32 }
 0x362   :  { %v993_v36 = vsel %vm985_vm9, %v752_v30, %v989_v10  ;;  %v1446_v41 = vcombine.low %v990_v38, %v991_v39 }
 0x363   :  { %v1447_v42 = vcombine.low %v992_v33, %v993_v36  ;;  %1629 = vmatmul.mubr.bf16.vlgmr.msra.gmra.mrb[8].mxu0 %v875_v37 }
 0x364   :  { %1648 = vmatprep.mubr.bf16.mxu1 %v1446_v41  ;;  %1653 = vmatpush3.bf16.msra.mxu0 %v2383_v26  ;;  %v1766_v26 = vld [vmem:[%s2464_s15 + $0x68] sm:$0xff]  }
 0x365   :  { %1649 = vmatmul.mubr.bf16.vlgmr.msra.gmra.mrb[8].mxu1 %v1447_v42  ;;  %1654 = vmatprep.subr.bf16.mxu0 %v1761_v40 }
 0x366   :  { %1673 = vmatpush3.bf16.msra.mxu1 %v1770_v48 }
 0x367   :  { %1674 = vmatprep.subr.bf16.mxu1 %v1771_v49 }
 0x368   :  { %1655 = vmatpush3.bf16.msra.mxu0 %v1761_v40 }
 0x369   :  { %1656 = vmatprep.subr.bf16.mxu0 %v1762_v43 }
 0x36a   :  { %1675 = vmatpush3.bf16.msra.mxu1 %v1771_v49 }
 0x36b   :  { %1676 = vmatprep.subr.bf16.mxu1 %v1772_v50 }
 0x36c   :  { %1657 = vmatpush3.bf16.msra.mxu0 %v1762_v43 }
 0x36d   :  { %1658 = vmatprep.subr.bf16.mxu0 %v1763_v44 }
 0x36e   :  { %1677 = vmatpush3.bf16.msra.mxu1 %v1772_v50 }
 0x36f   :  { %1678 = vmatprep.subr.bf16.mxu1 %v1773_v51 }
 0x370   :  { %1659 = vmatpush3.bf16.msra.mxu0 %v1763_v44 }
 0x371   :  { %1660 = vmatprep.subr.bf16.mxu0 %v1764_v45 }
 0x372   :  { %1679 = vmatpush3.bf16.msra.mxu1 %v1773_v51 }
 0x373   :  { %1680 = vmatprep.subr.bf16.mxu1 %v1774_v52 }
 0x374   :  { %1661 = vmatpush3.bf16.msra.mxu0 %v1764_v45 }
 0x375   :  { %1662 = vmatprep.subr.bf16.mxu0 %v1766_v26 }
 0x376   :  { %1681 = vmatpush3.bf16.msra.mxu1 %v1774_v52 }
 0x377   :  { %1682 = vmatprep.subr.bf16.mxu1 %v1775_v53 }
 0x378   :  { %1663 = vmatpush3.bf16.msra.mxu0 %v1766_v26 }
 0x379   :  { %1664 = vmatprep.subr.bf16.mxu0 %v1768_v46 }
 0x37a   :  { %1683 = vmatpush3.bf16.msra.mxu1 %v1775_v53 }
 0x37b   :  { %1684 = vmatprep.subr.bf16.mxu1 %v1776_v12 }
 0x37c   :  { %1665 = vmatpush3.bf16.msra.mxu0 %v1768_v46 }
 0x37d   :  { %1666 = vmatprep.subr.bf16.mxu0 %v1769_v47 }
 0x37e   :  { %1685 = vmatpush3.bf16.msra.mxu1 %v1776_v12 }
 0x37f   :  { %1686 = vmatprep.subr.bf16.mxu1 %v1779_v13 }
 0x380   :  { %1667 = vmatpush3.bf16.msra.mxu0 %v1769_v47 }
 0x382   :  { %1687 = vmatpush3.bf16.msra.mxu1 %v1779_v13 }
 0x436   :  { %v974_v54 = vpop.f32.mrb[8].mxu0 }
 0x437   :  { %v1630_v55 = vpop.f32.mrb[9].mxu0 }
 0x438   :  { %v977_v56 = vpop.f32.mrb[10].mxu0  ;;  %v1650_v9 = vpop.f32.mrb[8].mxu1 }
 0x439   :  { %v981_v57 = vpack.c.bf16 %v977_v56, %v974_v54  ;;  %v1631_v58 = vpop.f32.mrb[11].mxu0  ;;  %v1104_v59 = vpop.f32.mrb[9].mxu1 }
 0x43a   :  { %v1651_v61 = vpop.f32.mrb[10].mxu1 }
 0x43b   :  { %v1120_v63 = vpack.c.bf16 %v1651_v61, %v1650_v9  ;;  %v1107_v0 = vpop.f32.mrb[11].mxu1 }
 0x43c   :  { %v1119_v1 = vpack.c.bf16 %v1107_v0, %v1104_v59 }
 0x43d   :  { %v1138_v2 = vadd.bf16 %v1765_v60, %v1120_v63 }
 0x43e   :  { %v1137_v3 = vadd.bf16 %v1767_v62, %v1119_v1 }
 0x43f   :  { %v1140_v4 = vadd.bf16 %v1138_v2, %v981_v57 }
 0x440   :  { %v1139_v5 = vadd.bf16 %v1137_v3, %v981_v57 }
 0x441   :  { %v1144_v6 = vmul.bf16 1036860877, %v1140_v4  ;;  %vm1142_vm11 = vcmp.ge.bf16.partialorder %v1140_v4, 0 }
 0x442   :  { %vm1141_vm10 = vcmp.ge.bf16.partialorder %v1139_v5, 0  ;;  %v1143_v7 = vmul.bf16 1036860877, %v1139_v5 }
 0x443   :  { %v1146_v11 = vsel %vm1142_vm11, %v1140_v4, %v1144_v6 }
 0x444   :  { %v1145_v8 = vsel %vm1141_vm10, %v1139_v5, %v1143_v7 }
 0x445   :  { %1668 = vmatprep.mubr.bf16.mxu0 %v1145_v8 }
 0x446   :  { %1669 = vmatmul.mubr.bf16.vlgmr.msra.gmra.mrb[12].mxu0 %v1146_v11 }
 0x519   :  { %v1670_v14 = vpop.f32.mrb[12].mxu0 }
 0x51a   :  { %v1246_v15 = vpop.f32.mrb[13].mxu0 }
 0x51b   :  { %v1671_v16 = vpop.f32.mrb[14].mxu0 }
 0x51c   :  { %v1262_v18 = vpack.c.bf16 %v1671_v16, %v1670_v14  ;;  %v1249_v20 = vpop.f32.mrb[15].mxu0 }
 0x51d   :  { %v1261_v21 = vpack.c.bf16 %v1249_v20, %v1246_v15 }
 0x51e   :  { %v1281_v23 = vadd.bf16 %v1777_v19, %v1262_v18 }
 0x51f   :  { %v1280_v22 = vadd.bf16 %v1778_v17, %v1261_v21 }
 0x521   :  { %1688 = vmatprep.mubr.bf16.mxu1 %v1280_v22 }
 0x522   :  { %1689 = vmatmul.mubr.bf16.vlgmr.msra.gmra.mrb[12].mxu1 %v1281_v23 }
 0x5f5   :  { %v1690_v25 = vpop.f32.mrb[12].mxu1 }
 0x5f6   :  { %v1396_v27 = vadd.f32 %v1690_v25, %v1488_v24  ;;  %v1387_v28 = vpop.f32.mrb[13].mxu1 }
 0x5f7   :  { %v1388_v29 = vadd.f32 %v1488_v24, %v1387_v28  ;;  %v1691_v30 = vpop.f32.mrb[14].mxu1 }
 0x5f8   :  { %1404 = vst [vmem:[%s2467_s18 + $0x10] sm:$0xff] %v1396_v27  ;;  %v1399_v31 = vadd.f32 %v1691_v30, %v1488_v24  ;;  %v1390_v32 = vpop.f32.mrb[15].mxu1 }
 0x5f9   :  { %1402 = vst [vmem:[%s2467_s18] sm:$0xff] %v1388_v29  ;;  %v1391_v10 = vadd.f32 %v1488_v24, %v1390_v32 }
 0x5fa   :  { %1405 = vst [vmem:[%s2467_s18 + $0x18] sm:$0xff] %v1399_v31 }
 0x5fb   :  { %1403 = vst [vmem:[%s2467_s18 + $0x8] sm:$0xff] %v1391_v10 }
 0x5fc   :  { %1410 = vsyncpa [#allocation3], 1 }
 0x5fd   :  { %1411 = vsyncpa [#allocation5], 1 }
 0x5fe   :  { %1412 = vsyncpa [#allocation8], 1 }
 0x5ff   :  { %1413 = vsyncpa [#allocation11], 1 }
 0x600   :  { %1414 = vsyncpa [#allocation14], 1 }
 0x601   :  { %1415 = vsyncpa [#allocation17], 1 }

</bundles_post_ra>
